<compile_context>
chip_gen: v7x
topology: tpu7x:2x2x1
jax: 0.10.0
libtpu: 0.0.40
codegen_flags: <defaults>
</compile_context>

<pallas_src>
import jax
import jax.numpy as jnp
from jax.experimental import pallas as pl
from jax.experimental.pallas import tpu as pltpu


def conv3x3_kernel(x_ref, w_ref, b_ref, o_ref, xp_ref):
    # x_ref : (N, H, W)      unpadded input block in VMEM
    # w_ref : (3, 3)         conv weights in SMEM
    # b_ref : (1,)           bias in SMEM
    # o_ref : (N, H, W)      output block in VMEM
    # xp_ref: (N, H+2, W+2)  f32 VMEM scratch holding the zero-padded tile
    N, H, W = o_ref.shape

    # In-kernel halo (replaces host-side jnp.pad): zero the padded scratch,
    # then copy the tile into its interior.
    xp_ref[...] = jnp.zeros_like(xp_ref)
    xp_ref[:, 1:H + 1, 1:W + 1] = x_ref[...]

    # Hoist the 9 scalar weight reads and the bias read out of the tap loop.
    w = [[w_ref[ki, kj] for kj in range(3)] for ki in range(3)]
    acc = jnp.full((N, H, W), b_ref[0], dtype=jnp.float32)

    # 3x3 conv as 9 shifted multiply-accumulates (VPU work) on the padded
    # scratch; accumulation stays in f32.
    for ki in range(3):
        for kj in range(3):
            acc = acc + w[ki][kj] * xp_ref[:, ki:ki + H, kj:kj + W]

    o_ref[...] = acc.astype(o_ref.dtype)


def testnet_forward(x, weight, bias):
    """x: (N, 1, H, W) float32, weight: (1, 1, 3, 3), bias: (1,). Returns (N, 1, H, W)."""
    N, C, H, W = x.shape
    assert C == 1
    x3 = x[:, 0, :, :]          # (N, H, W)  -- no host-side padding
    w = weight[0, 0]            # (3, 3)

    out = pl.pallas_call(
        conv3x3_kernel,
        out_shape=jax.ShapeDtypeStruct((N, H, W), x.dtype),
        grid_spec=pltpu.PrefetchScalarGridSpec(
            num_scalar_prefetch=0,
            grid=(1,),  # whole problem in one step: no per-image step overhead
            in_specs=[
                pl.BlockSpec((N, H, W), lambda i: (0, 0, 0)),
                pl.BlockSpec(memory_space=pltpu.SMEM),   # weights (3, 3)
                pl.BlockSpec(memory_space=pltpu.SMEM),   # bias (1,)
            ],
            out_specs=pl.BlockSpec((N, H, W), lambda i: (0, 0, 0)),
            scratch_shapes=[pltpu.VMEM((N, H + 2, W + 2), jnp.float32)],
        ),
        compiler_params=pltpu.CompilerParams(
            dimension_semantics=("arbitrary",)),  # single step; nothing to shard
    )(x3, w, bias)

    return out[:, None, :, :]   # (N, 1, H, W)


def _reference(x, weight, bias):
    return jax.lax.conv_general_dilated(
        x, weight, window_strides=(1, 1), padding=((1, 1), (1, 1)),
        dimension_numbers=("NCHW", "OIHW", "NCHW")) + bias[None, :, None, None]


if __name__ == "__main__":
    key = jax.random.PRNGKey(0)
    kx, kw, kb, kx2 = jax.random.split(key, 4)

    # Deterministic parameter init with Conv2d(1, 1, 3) shapes.
    fan_in = 1 * 3 * 3
    bound = 1.0 / (fan_in ** 0.5)
    weight = jax.random.uniform(kw, (1, 1, 3, 3), jnp.float32, -bound, bound)
    bias = jax.random.uniform(kb, (1,), jnp.float32, -bound, bound)

    # Small demo shape consistent with the module: N=2, C=1, H=W=16.
    N, C, H, W = 2, 1, 16, 16
    x = jax.random.normal(kx, (N, C, H, W), dtype=jnp.float32)
    y = testnet_forward(x, weight, bias)
    jax.block_until_ready(y)
    ref = _reference(x, weight, bias)
    assert y.shape == (N, C, H, W)
    assert jnp.allclose(y, ref, atol=1e-5), "mismatch vs reference conv (16x16)"

    # Lane-dense shape (W multiple of 128): same kernel, unmasked stores.
    N2, H2, W2 = 2, 128, 128
    x2 = jax.random.normal(kx2, (N2, 1, H2, W2), dtype=jnp.float32)
    y2 = testnet_forward(x2, weight, bias)
    jax.block_until_ready(y2)
    ref2 = _reference(x2, weight, bias)
    assert y2.shape == (N2, 1, H2, W2)
    assert jnp.allclose(y2, ref2, atol=1e-5), "mismatch vs reference conv (128x128)"

    print("KERNEL_OK")
</pallas_src>

<mosaic_0001>
module attributes {stable_mosaic.version = 11 : i64} {
  func.func @conv3x3_kernel(%arg0: i32, %arg1: memref<2x16x16xf32, #tpu.memory_space<vmem>>, %arg2: memref<3x3xf32, #tpu.memory_space<smem>>, %arg3: memref<1xf32, #tpu.memory_space<smem>>, %arg4: memref<2x16x16xf32, #tpu.memory_space<vmem>>, %arg5: memref<2x18x18xf32, #tpu.memory_space<vmem>>) attributes {dimension_semantics = [#tpu.dimension_semantics<arbitrary>], iteration_bounds = array<i64: 1>, scalar_prefetch = 0 : i64, scratch_operands = 1 : i64, tpu.core_type = #tpu.core_type<tc>, window_params = [{pipeline_mode = #tpu.pipeline_mode<synchronous>, transform_indices = @transform_0, window_bounds = array<i64: 2, 16, 16>}, {transform_indices = @transform_1, window_bounds = array<i64: 3, 3>}, {transform_indices = @transform_2, window_bounds = array<i64: 1>}, {pipeline_mode = #tpu.pipeline_mode<synchronous>, transform_indices = @transform_3, window_bounds = array<i64: 2, 16, 16>}]} {
    %cst = arith.constant 0.000000e+00 : f32
    %0 = vector.broadcast %cst : f32 to vector<2x18x18xf32>
    %c0 = arith.constant 0 : index
    %c0_0 = arith.constant 0 : index
    %c0_1 = arith.constant 0 : index
    %1 = vector.load %arg5[%c0, %c0_0, %c0_1] : memref<2x18x18xf32, #tpu.memory_space<vmem>>, vector<2x18x18xf32>
    tpu.vector_store %arg5[%c0, %c0_0, %c0_1], %0 {strides = array<i32>} : memref<2x18x18xf32, #tpu.memory_space<vmem>>, vector<2x18x18xf32>,
    %c0_2 = arith.constant 0 : index
    %c0_3 = arith.constant 0 : index
    %c0_4 = arith.constant 0 : index
    %2 = vector.load %arg1[%c0_2, %c0_3, %c0_4] : memref<2x16x16xf32, #tpu.memory_space<vmem>>, vector<2x16x16xf32>
    %c0_5 = arith.constant 0 : index
    %c1 = arith.constant 1 : index
    %c1_6 = arith.constant 1 : index
    %3 = vector.load %arg5[%c0_5, %c1, %c1_6] : memref<2x18x18xf32, #tpu.memory_space<vmem>>, vector<2x16x16xf32>
    tpu.vector_store %arg5[%c0_5, %c1, %c1_6], %2 {strides = array<i32>} : memref<2x18x18xf32, #tpu.memory_space<vmem>>, vector<2x16x16xf32>,
    %c0_7 = arith.constant 0 : index
    %c0_8 = arith.constant 0 : index
    %4 = memref.load %arg2[%c0_7, %c0_8] : memref<3x3xf32, #tpu.memory_space<smem>>
    %c0_9 = arith.constant 0 : index
    %c1_10 = arith.constant 1 : index
    %5 = memref.load %arg2[%c0_9, %c1_10] : memref<3x3xf32, #tpu.memory_space<smem>>
    %c0_11 = arith.constant 0 : index
    %c2 = arith.constant 2 : index
    %6 = memref.load %arg2[%c0_11, %c2] : memref<3x3xf32, #tpu.memory_space<smem>>
    %c1_12 = arith.constant 1 : index
    %c0_13 = arith.constant 0 : index
    %7 = memref.load %arg2[%c1_12, %c0_13] : memref<3x3xf32, #tpu.memory_space<smem>>
    %c1_14 = arith.constant 1 : index
    %c1_15 = arith.constant 1 : index
    %8 = memref.load %arg2[%c1_14, %c1_15] : memref<3x3xf32, #tpu.memory_space<smem>>
    %c1_16 = arith.constant 1 : index
    %c2_17 = arith.constant 2 : index
    %9 = memref.load %arg2[%c1_16, %c2_17] : memref<3x3xf32, #tpu.memory_space<smem>>
    %c2_18 = arith.constant 2 : index
    %c0_19 = arith.constant 0 : index
    %10 = memref.load %arg2[%c2_18, %c0_19] : memref<3x3xf32, #tpu.memory_space<smem>>
    %c2_20 = arith.constant 2 : index
    %c1_21 = arith.constant 1 : index
    %11 = memref.load %arg2[%c2_20, %c1_21] : memref<3x3xf32, #tpu.memory_space<smem>>
    %c2_22 = arith.constant 2 : index
    %c2_23 = arith.constant 2 : index
    %12 = memref.load %arg2[%c2_22, %c2_23] : memref<3x3xf32, #tpu.memory_space<smem>>
    %c0_24 = arith.constant 0 : index
    %13 = memref.load %arg3[%c0_24] : memref<1xf32, #tpu.memory_space<smem>>
    %14 = vector.broadcast %13 : f32 to vector<2x16x16xf32>
    %c0_25 = arith.constant 0 : index
    %c0_26 = arith.constant 0 : index
    %c0_27 = arith.constant 0 : index
    %15 = vector.load %arg5[%c0_25, %c0_26, %c0_27] : memref<2x18x18xf32, #tpu.memory_space<vmem>>, vector<2x16x16xf32>
    %16 = vector.broadcast %4 : f32 to vector<2x16x16xf32>
    %17 = arith.mulf %16, %15 : vector<2x16x16xf32>
    %18 = arith.addf %14, %17 : vector<2x16x16xf32>
    %c0_28 = arith.constant 0 : index
    %c0_29 = arith.constant 0 : index
    %c1_30 = arith.constant 1 : index
    %19 = vector.load %arg5[%c0_28, %c0_29, %c1_30] : memref<2x18x18xf32, #tpu.memory_space<vmem>>, vector<2x16x16xf32>
    %20 = vector.broadcast %5 : f32 to vector<2x16x16xf32>
    %21 = arith.mulf %20, %19 : vector<2x16x16xf32>
    %22 = arith.addf %18, %21 : vector<2x16x16xf32>
    %c0_31 = arith.constant 0 : index
    %c0_32 = arith.constant 0 : index
    %c2_33 = arith.constant 2 : index
    %23 = vector.load %arg5[%c0_31, %c0_32, %c2_33] : memref<2x18x18xf32, #tpu.memory_space<vmem>>, vector<2x16x16xf32>
    %24 = vector.broadcast %6 : f32 to vector<2x16x16xf32>
    %25 = arith.mulf %24, %23 : vector<2x16x16xf32>
    %26 = arith.addf %22, %25 : vector<2x16x16xf32>
    %c0_34 = arith.constant 0 : index
    %c1_35 = arith.constant 1 : index
    %c0_36 = arith.constant 0 : index
    %27 = vector.load %arg5[%c0_34, %c1_35, %c0_36] : memref<2x18x18xf32, #tpu.memory_space<vmem>>, vector<2x16x16xf32>
    %28 = vector.broadcast %7 : f32 to vector<2x16x16xf32>
    %29 = arith.mulf %28, %27 : vector<2x16x16xf32>
    %30 = arith.addf %26, %29 : vector<2x16x16xf32>
    %c0_37 = arith.constant 0 : index
    %c1_38 = arith.constant 1 : index
    %c1_39 = arith.constant 1 : index
    %31 = vector.load %arg5[%c0_37, %c1_38, %c1_39] : memref<2x18x18xf32, #tpu.memory_space<vmem>>, vector<2x16x16xf32>
    %32 = vector.broadcast %8 : f32 to vector<2x16x16xf32>
    %33 = arith.mulf %32, %31 : vector<2x16x16xf32>
    %34 = arith.addf %30, %33 : vector<2x16x16xf32>
    %c0_40 = arith.constant 0 : index
    %c1_41 = arith.constant 1 : index
    %c2_42 = arith.constant 2 : index
    %35 = vector.load %arg5[%c0_40, %c1_41, %c2_42] : memref<2x18x18xf32, #tpu.memory_space<vmem>>, vector<2x16x16xf32>
    %36 = vector.broadcast %9 : f32 to vector<2x16x16xf32>
    %37 = arith.mulf %36, %35 : vector<2x16x16xf32>
    %38 = arith.addf %34, %37 : vector<2x16x16xf32>
    %c0_43 = arith.constant 0 : index
    %c2_44 = arith.constant 2 : index
    %c0_45 = arith.constant 0 : index
    %39 = vector.load %arg5[%c0_43, %c2_44, %c0_45] : memref<2x18x18xf32, #tpu.memory_space<vmem>>, vector<2x16x16xf32>
    %40 = vector.broadcast %10 : f32 to vector<2x16x16xf32>
    %41 = arith.mulf %40, %39 : vector<2x16x16xf32>
    %42 = arith.addf %38, %41 : vector<2x16x16xf32>
    %c0_46 = arith.constant 0 : index
    %c2_47 = arith.constant 2 : index
    %c1_48 = arith.constant 1 : index
    %43 = vector.load %arg5[%c0_46, %c2_47, %c1_48] : memref<2x18x18xf32, #tpu.memory_space<vmem>>, vector<2x16x16xf32>
    %44 = vector.broadcast %11 : f32 to vector<2x16x16xf32>
    %45 = arith.mulf %44, %43 : vector<2x16x16xf32>
    %46 = arith.addf %42, %45 : vector<2x16x16xf32>
    %c0_49 = arith.constant 0 : index
    %c2_50 = arith.constant 2 : index
    %c2_51 = arith.constant 2 : index
    %47 = vector.load %arg5[%c0_49, %c2_50, %c2_51] : memref<2x18x18xf32, #tpu.memory_space<vmem>>, vector<2x16x16xf32>
    %48 = vector.broadcast %12 : f32 to vector<2x16x16xf32>
    %49 = arith.mulf %48, %47 : vector<2x16x16xf32>
    %50 = arith.addf %46, %49 : vector<2x16x16xf32>
    %c0_52 = arith.constant 0 : index
    %c0_53 = arith.constant 0 : index
    %c0_54 = arith.constant 0 : index
    %51 = vector.load %arg4[%c0_52, %c0_53, %c0_54] : memref<2x16x16xf32, #tpu.memory_space<vmem>>, vector<2x16x16xf32>
    tpu.vector_store %arg4[%c0_52, %c0_53, %c0_54], %50 {strides = array<i32>} : memref<2x16x16xf32, #tpu.memory_space<vmem>>, vector<2x16x16xf32>,
    return
  }
  func.func @transform_0(%arg0: i32) -> (i32, i32, i32) {
    %c0_i32 = arith.constant 0 : i32
    %c0_i32_0 = arith.constant 0 : i32
    %c0_i32_1 = arith.constant 0 : i32
    %c0_i32_2 = arith.constant 0 : i32
    return %c0_i32, %c0_i32_0, %c0_i32_1 : i32, i32, i32
  }
  func.func @transform_1(%arg0: i32) -> (i32, i32) {
    %c0_i32 = arith.constant 0 : i32
    %c0_i32_0 = arith.constant 0 : i32
    %c0_i32_1 = arith.constant 0 : i32
    return %c0_i32, %c0_i32_0 : i32, i32
  }
  func.func @transform_2(%arg0: i32) -> i32 {
    %c0_i32 = arith.constant 0 : i32
    %c0_i32_0 = arith.constant 0 : i32
    return %c0_i32 : i32
  }
  func.func @transform_3(%arg0: i32) -> (i32, i32, i32) {
    %c0_i32 = arith.constant 0 : i32
    %c0_i32_0 = arith.constant 0 : i32
    %c0_i32_1 = arith.constant 0 : i32
    %c0_i32_2 = arith.constant 0 : i32
    return %c0_i32, %c0_i32_0, %c0_i32_1 : i32, i32, i32
  }
}

</mosaic_0001>

<bundles_post_ra>
// kernel: tpu_custom_call.1
= control target key start
LH: loop header
LB: loop body
LE: loop exit
PB: predicated region body
PF: predicated region fallthrough
CT: control target
= control target key end

     0   :  { %9 = vsyncpa [#allocation5], 0  ;;  %s531_s0 = inlined_call_operand.hbm [shape: f32[2,16,16], index: 0, kind: input, shape index: {}]   ;;  %s532_s1 = inlined_call_operand.vmem [shape: f32[3,3], index: 1, kind: input, shape index: {}]   ;;  %s533_s2 = inlined_call_operand.<no memory space> [shape: f32[1], index: 2, kind: input, shape index: {}]   ;;  %s534_s3 = inlined_call_operand.hbm [shape: f32[2,16,16], index: 3, kind: output, shape index: {}]  }
   0x1   :  { %10 = vsyncpa [#allocation7], 0 }
   0x2   :  { %11 = vsyncpa [#allocation6], 0  ;;  %s378_s12 = smov [#allocation4]   ;;  %s30_s16 = sshll.u32 %s532_s1, 4  ;;  %s31_s16 = int_to_ptr.vmem [resolvable:$true] %s30_s16 }
   0x3   :  { %s17_s13 = sshll.u32 %s378_s12, 4  ;;  %s316_s19 = scalar_lea.hbm %s531_s0, 512  ;;  %s18_s13 = int_to_ptr.vmem [resolvable:$true] %s17_s13 }
   0x4   :  { %p317_p0 = scmp.ne.s32.totalorder %s531_s0, %s316_s19  ;;  %p320_p1 = scmp.lt.u32.totalorder %s316_s19, %s531_s0 }
   0x6   :  { %p322_p2 = pnand %p320_p1, %p317_p0 }
   0x8   :  { %325 = shalt.err (!%p322_p2)
}
   0x9   :  { %s326_s24 = scalar_lea.vmem %s18_s13, 512  ;;  %p331_p4 = scmp.lt.s32.totalorder %s18_s13, %s18_s13 }
   0xa   :  { %p327_p3 = scmp.ne.s32.totalorder %s18_s13, %s326_s24  ;;  %p332_p5 = scmp.lt.s32.totalorder %s326_s24, %s326_s24 }
   0xc   :  { %p333_p6 = por %p332_p5, %p331_p4 }
   0xe   :  { %p334_p7 = pnand %p333_p6, %p327_p3 }
  0x10   :  { %337 = shalt.err (!%p334_p7)
}
  0x11   :  { %s379_s1 = smov 128   ;;  %s380_s25 = smov 8  }
  0x12   :  { %23 = dma.hbm_to_vmem [thread:$0]  %s531_s0, 512, %s18_s13, [#allocation5], %s379_s1, %s379_s1, %s380_s25  }
  0x13   :  { %s338_s28 = scalar_lea.vmem %s31_s16, 64  ;;  %p343_p9 = scmp.lt.s32.totalorder %s31_s16, %s31_s16 }
  0x14   :  { %p339_p8 = scmp.ne.s32.totalorder %s31_s16, %s338_s28  ;;  %p344_p10 = scmp.lt.s32.totalorder %s338_s28, %s338_s28 }
  0x16   :  { %p345_p11 = por %p344_p10, %p343_p9 }
  0x18   :  { %p346_p12 = pnand %p345_p11, %p339_p8 }
  0x1a   :  { %349 = shalt.err (!%p346_p12)
}
  0x1b   :  { %s381_s29 = smov [#allocation8]  }
  0x1c   :  { %33 = dma.vmem_to_smem %s31_s16, 64, %s381_s29, [#allocation7]  }
  0x1d   :  { %372 = dma.done.wait [#allocation5], 512  }
  0x1e   :  { %373 = vsyncadd [#allocation5], 4294966784 }
  0x1f   :  { %374 = dma.done.wait [#allocation7], 64  }
  0x20   :  { %375 = vsyncadd [#allocation7], 4294967232 }
  0x21   :  { %42 = sfence }
  0x22   :  { %v53_v0 = vld [vmem:[#allocation4 + $0x10] sm:$0xff]  ;;  %v51_v1 = vld [vmem:[#allocation4] sm:$0xff]  ;;  %vm43_vm0 = vcmask 146432   ;;  %s382_s30 = smov 1   ;;  %vm46_vm1 = vcmask 140288   ;;  %v54_v2 = vld [vmem:[#allocation4 + $0x18] sm:$0xff]  ;;  %v86_v54 = vstv %s533_s2 }
  0x23   :  { %63 = vrot.lane.b32.xlu1 %v53_v0, %s382_s30  ;;  %59 = vrot.lane.b32.xlu0 %v51_v1, %s382_s30  ;;  %v52_v3 = vld [vmem:[#allocation4 + $0x8] sm:$0xff]  ;;  %v383_v4 = vmov 0.0   ;;  %vm71_vm2 = vcmask 138248   ;;  %s299_s0 = sld [smem:[#allocation8 + $0x1]]  ;;  %s300_s4 = sld [smem:[#allocation8 + $0x2]]  ;;  %vm276_vm3 = vcmask 130048  }
  0x24   :  { %48 = vst.msk [vmem:[#allocation2 + $0x18] sm:$0xff] %vm43_vm0, %v383_v4  ;;  %49 = vst.msk [vmem:[#allocation2 + $0x20] sm:$0xff] %vm43_vm0, %v383_v4  ;;  %s384_s5 = smov 127   ;;  %s302_s6 = sld [smem:[#allocation8 + $0x81]] }
  0x25   :  { %44 = vst.msk [vmem:[#allocation2] sm:$0xff] %vm43_vm0, %v383_v4  ;;  %45 = vst.msk [vmem:[#allocation2 + $0x8] sm:$0xff] %vm43_vm0, %v383_v4  ;;  %s385_s7 = smov 126   ;;  %s303_s8 = sld [smem:[#allocation8 + $0x82]] }
  0x26   :  { %50 = vst.msk [vmem:[#allocation2 + $0x28] sm:$0x3] %vm46_vm1, %v383_v4  ;;  %47 = vst.msk [vmem:[#allocation2 + $0x10] sm:$0x3] %vm46_vm1, %v383_v4  ;;  %s305_s9 = sld [smem:[#allocation8 + $0x101]]  ;;  %s306_s10 = sld [smem:[#allocation8 + $0x102]] }
  0x27   :  { %65 = vrot.lane.b32.xlu1 %v54_v2, %s382_s30  ;;  %61 = vrot.lane.b32.xlu0 %v52_v3, %s382_s30  ;;  %s76_s11 = sld [smem:[#allocation8]]  ;;  %s386_s15 = smov [#allocation9]  }
  0x28   :  { %s301_s12 = sld [smem:[#allocation8 + $0x80]]  ;;  %s286_s16 = sshll.u32 %s386_s15, 4  ;;  %s287_s16 = int_to_ptr.vmem [resolvable:$true] %s286_s16 }
  0x29   :  { %v100_v9 = vstv %s299_s0  ;;  %v125_v17 = vstv %s300_s4  ;;  %s304_s2 = sld [smem:[#allocation8 + $0x100]]  ;;  %s350_s17 = scalar_lea.vmem %s287_s16, 512 }
  0x2a   :  { %v163_v23 = vstv %s302_s6  ;;  %p351_p13 = scmp.ne.s32.totalorder %s287_s16, %s350_s17  ;;  %p355_p0 = scmp.lt.s32.totalorder %s287_s16, %s287_s16 }
  0x2b   :  { %v188_v31 = vstv %s303_s8  ;;  %p356_p1 = scmp.lt.s32.totalorder %s350_s17, %s350_s17 }
  0x2c   :  { %v226_v37 = vstv %s305_s9  ;;  %v251_v45 = vstv %s306_s10 }
  0x2d   :  { %v91_v51 = vstv %s76_s11  ;;  %p357_p2 = por %p356_p1, %p355_p0 }
  0x2e   :  { %v154_v60 = vstv %s301_s12 }
  0x2f   :  { %p358_p3 = pnand %p357_p2, %p351_p13 }
  0x95   :  { %v64_v5 = vpop.permute.xlu1 %63  ;;  %v60_v6 = vpop.permute.xlu0 %59 }
  0x96   :  { %74 = vst.msk [vmem:[#allocation2 + $0x19] sm:$0xff] %vm71_vm2, %v64_v5  ;;  %72 = vst.msk [vmem:[#allocation2 + $0x1] sm:$0xff] %vm71_vm2, %v60_v6 }
  0x99   :  { %v66_v7 = vpop.permute.xlu1 %65  ;;  %v62_v8 = vpop.permute.xlu0 %61 }
  0x9a   :  { %75 = vst.msk [vmem:[#allocation2 + $0x21] sm:$0xff] %vm71_vm2, %v66_v7  ;;  %73 = vst.msk [vmem:[#allocation2 + $0x9] sm:$0xff] %vm71_vm2, %v62_v8 }
  0x9d   :  { %v425_v10 = vld [vmem:[#allocation2] sm:$0xff]  ;;  %v427_v11 = vld [vmem:[#allocation2 + $0x18] sm:$0xff] }
  0x9e   :  { %v101_v12 = vmul.f32 %v100_v9, %v425_v10  ;;  %v103_v13 = vmul.f32 %v100_v9, %v427_v11  ;;  %v126_v19 = vmul.f32 %v125_v17, %v425_v10  ;;  %v128_v21 = vmul.f32 %v125_v17, %v427_v11  ;;  %v445_v22 = vld [vmem:[#allocation2 + $0x1] sm:$0xff]  ;;  %v453_v27 = vld [vmem:[#allocation2 + $0x19] sm:$0xff] }
  0x9f   :  { %v164_v25 = vmul.f32 %v163_v23, %v445_v22  ;;  %v166_v29 = vmul.f32 %v163_v23, %v453_v27  ;;  %v189_v33 = vmul.f32 %v188_v31, %v445_v22  ;;  %v191_v35 = vmul.f32 %v188_v31, %v453_v27 }
  0xa0   :  { %109 = vrot.lane.b32.xlu0 %v101_v12, %s384_s5  ;;  %v92_v53 = vmul.f32 %v91_v51, %v425_v10  ;;  %v94_v59 = vmul.f32 %v91_v51, %v427_v11  ;;  %v155_v0 = vmul.f32 %v154_v60, %v445_v22  ;;  %v157_v10 = vmul.f32 %v154_v60, %v453_v27 }
  0xa1   :  { %v432_v14 = vld [vmem:[#allocation2 + $0x8] sm:$0xff]  ;;  %v435_v16 = vld [vmem:[#allocation2 + $0x20] sm:$0xff] }
  0xa2   :  { %v102_v15 = vmul.f32 %v100_v9, %v432_v14  ;;  %v104_v18 = vmul.f32 %v100_v9, %v435_v16  ;;  %v127_v20 = vmul.f32 %v125_v17, %v432_v14  ;;  %v129_v24 = vmul.f32 %v125_v17, %v435_v16  ;;  %v451_v26 = vld [vmem:[#allocation2 + $0x9] sm:$0xff]  ;;  %v459_v30 = vld [vmem:[#allocation2 + $0x21] sm:$0xff] }
  0xa3   :  { %v165_v28 = vmul.f32 %v163_v23, %v451_v26  ;;  %v167_v32 = vmul.f32 %v163_v23, %v459_v30  ;;  %v190_v34 = vmul.f32 %v188_v31, %v451_v26  ;;  %v469_v36 = vld [vmem:[#allocation2 + $0x2] sm:$0xff]  ;;  %v192_v38 = vmul.f32 %v188_v31, %v459_v30  ;;  %v475_v40 = vld [vmem:[#allocation2 + $0xa] sm:$0xff]  ;;  %v477_v41 = vld [vmem:[#allocation2 + $0x1a] sm:$0xff] }
  0xa4   :  { %111 = vrot.lane.b32.xlu1 %v102_v15, %s384_s5  ;;  %113 = vrot.lane.b32.xlu0 %v103_v13, %s384_s5  ;;  %v227_v39 = vmul.f32 %v226_v37, %v469_v36  ;;  %v228_v42 = vmul.f32 %v226_v37, %v475_v40  ;;  %v229_v43 = vmul.f32 %v226_v37, %v477_v41  ;;  %v483_v44 = vld [vmem:[#allocation2 + $0x22] sm:$0xff] }
  0xa5   :  { %v230_v46 = vmul.f32 %v226_v37, %v483_v44  ;;  %v252_v47 = vmul.f32 %v251_v45, %v469_v36  ;;  %v253_v48 = vmul.f32 %v251_v45, %v475_v40  ;;  %v254_v49 = vmul.f32 %v251_v45, %v477_v41 }
  0xa6   :  { %v255_v50 = vmul.f32 %v251_v45, %v483_v44  ;;  %v96_v57 = vadd.f32 %v92_v53, %v86_v54  ;;  %v93_v58 = vmul.f32 %v91_v51, %v432_v14  ;;  %v98_v2 = vadd.f32 %v94_v59, %v86_v54 }
  0xa7   :  { %v95_v3 = vmul.f32 %v91_v51, %v435_v16  ;;  %v156_v14 = vmul.f32 %v154_v60, %v451_v26 }
  0xa8   :  { %115 = vrot.lane.b32.xlu1 %v104_v18, %s384_s5  ;;  %134 = vrot.lane.b32.xlu0 %v126_v19, %s385_s7  ;;  %v97_v1 = vadd.f32 %v93_v58, %v86_v54 }
  0xa9   :  { %v99_v12 = vadd.f32 %v95_v3, %v86_v54 }
  0xac   :  { %136 = vrot.lane.b32.xlu1 %v127_v20, %s385_s7  ;;  %138 = vrot.lane.b32.xlu0 %v128_v21, %s385_s7  ;;  %v158_v21 = vmul.f32 %v154_v60, %v459_v30 }
  0xb0   :  { %140 = vrot.lane.b32.xlu1 %v129_v24, %s385_s7  ;;  %172 = vrot.lane.b32.xlu0 %v164_v25, %s384_s5  ;;  %v217_v25 = vstv %s304_s2 }
  0xb1   :  { %v220_v30 = vmul.f32 %v217_v25, %v477_v41 }
  0xb4   :  { %174 = vrot.lane.b32.xlu1 %v165_v28, %s384_s5  ;;  %176 = vrot.lane.b32.xlu0 %v166_v29, %s384_s5 }
  0xb8   :  { %178 = vrot.lane.b32.xlu1 %v167_v32, %s384_s5  ;;  %197 = vrot.lane.b32.xlu0 %v189_v33, %s385_s7  ;;  %v218_v32 = vmul.f32 %v217_v25, %v469_v36 }
  0xbc   :  { %199 = vrot.lane.b32.xlu1 %v190_v34, %s385_s7  ;;  %201 = vrot.lane.b32.xlu0 %v191_v35, %s385_s7 }
  0xc0   :  { %203 = vrot.lane.b32.xlu1 %v192_v38, %s385_s7  ;;  %235 = vrot.lane.b32.xlu0 %v227_v39, %s384_s5 }
  0xc4   :  { %237 = vrot.lane.b32.xlu1 %v228_v42, %s384_s5  ;;  %239 = vrot.lane.b32.xlu0 %v229_v43, %s384_s5  ;;  %v219_v42 = vmul.f32 %v217_v25, %v475_v40 }
  0xc8   :  { %241 = vrot.lane.b32.xlu1 %v230_v46, %s384_s5  ;;  %260 = vrot.lane.b32.xlu0 %v252_v47, %s385_s7 }
  0xcc   :  { %262 = vrot.lane.b32.xlu1 %v253_v48, %s385_s7  ;;  %264 = vrot.lane.b32.xlu0 %v254_v49, %s385_s7 }
  0xd0   :  { %266 = vrot.lane.b32.xlu1 %v255_v50, %s385_s7  ;;  %v221_v50 = vmul.f32 %v217_v25, %v483_v44 }
 0x112   :  { %v110_v52 = vpop.permute.xlu0 %109 }
 0x113   :  { %v121_v61 = vadd.f32 %v110_v52, %v96_v57 }
 0x116   :  { %v112_v55 = vpop.permute.xlu1 %111  ;;  %v114_v56 = vpop.permute.xlu0 %113 }
 0x117   :  { %v122_v5 = vadd.f32 %v112_v55, %v97_v1  ;;  %v123_v6 = vadd.f32 %v114_v56, %v98_v2 }
 0x11a   :  { %v116_v62 = vpop.permute.xlu1 %115  ;;  %v135_v63 = vpop.permute.xlu0 %134 }
 0x11b   :  { %v146_v4 = vadd.f32 %v135_v63, %v121_v61  ;;  %v124_v15 = vadd.f32 %v116_v62, %v99_v12 }
 0x11d   :  { %v159_v7 = vadd.f32 %v155_v0, %v146_v4 }
 0x11e   :  { %v137_v8 = vpop.permute.xlu1 %136  ;;  %v139_v9 = vpop.permute.xlu0 %138 }
 0x11f   :  { %v147_v11 = vadd.f32 %v137_v8, %v122_v5  ;;  %v148_v13 = vadd.f32 %v139_v9, %v123_v6 }
 0x121   :  { %v160_v17 = vadd.f32 %v156_v14, %v147_v11  ;;  %v161_v18 = vadd.f32 %v157_v10, %v148_v13 }
 0x122   :  { %v141_v19 = vpop.permute.xlu1 %140  ;;  %v173_v20 = vpop.permute.xlu0 %172 }
 0x123   :  { %v149_v16 = vadd.f32 %v141_v19, %v124_v15  ;;  %v184_v28 = vadd.f32 %v173_v20, %v159_v7 }
 0x125   :  { %v162_v22 = vadd.f32 %v158_v21, %v149_v16 }
 0x126   :  { %v175_v23 = vpop.permute.xlu1 %174  ;;  %v177_v24 = vpop.permute.xlu0 %176 }
 0x127   :  { %v185_v26 = vadd.f32 %v175_v23, %v160_v17  ;;  %v186_v33 = vadd.f32 %v177_v24, %v161_v18 }
 0x12a   :  { %v179_v27 = vpop.permute.xlu1 %178  ;;  %v198_v29 = vpop.permute.xlu0 %197 }
 0x12b   :  { %v209_v31 = vadd.f32 %v198_v29, %v184_v28  ;;  %v187_v43 = vadd.f32 %v179_v27, %v162_v22 }
 0x12d   :  { %v222_v34 = vadd.f32 %v218_v32, %v209_v31 }
 0x12e   :  { %v200_v35 = vpop.permute.xlu1 %199  ;;  %v202_v37 = vpop.permute.xlu0 %201 }
 0x12f   :  { %v210_v38 = vadd.f32 %v200_v35, %v185_v26  ;;  %v211_v39 = vadd.f32 %v202_v37, %v186_v33 }
 0x131   :  { %v223_v45 = vadd.f32 %v219_v42, %v210_v38  ;;  %v224_v46 = vadd.f32 %v220_v30, %v211_v39 }
 0x132   :  { %v204_v47 = vpop.permute.xlu1 %203  ;;  %v236_v48 = vpop.permute.xlu0 %235 }
 0x133   :  { %v212_v49 = vadd.f32 %v204_v47, %v187_v43  ;;  %v247_v53 = vadd.f32 %v236_v48, %v222_v34 }
 0x135   :  { %v225_v36 = vadd.f32 %v221_v50, %v212_v49 }
 0x136   :  { %v238_v51 = vpop.permute.xlu1 %237  ;;  %v240_v52 = vpop.permute.xlu0 %239 }
 0x137   :  { %v248_v57 = vadd.f32 %v238_v51, %v223_v45  ;;  %v249_v40 = vadd.f32 %v240_v52, %v224_v46 }
 0x13a   :  { %v242_v54 = vpop.permute.xlu1 %241  ;;  %v261_v55 = vpop.permute.xlu0 %260 }
 0x13b   :  { %v272_v56 = vadd.f32 %v261_v55, %v247_v53  ;;  %v250_v61 = vadd.f32 %v242_v54, %v225_v36 }
 0x13d   :  { %277 = vst.msk [vmem:[#allocation9] sm:$0xff] %vm276_vm3, %v272_v56 }
 0x13e   :  { %v263_v41 = vpop.permute.xlu1 %262  ;;  %v265_v58 = vpop.permute.xlu0 %264 }
 0x13f   :  { %v273_v59 = vadd.f32 %v263_v41, %v248_v57  ;;  %v274_v60 = vadd.f32 %v265_v58, %v249_v40 }
 0x141   :  { %278 = vst.msk [vmem:[#allocation9 + $0x8] sm:$0xff] %vm276_vm3, %v273_v59  ;;  %279 = vst.msk [vmem:[#allocation9 + $0x10] sm:$0xff] %vm276_vm3, %v274_v60 }
 0x142   :  { %v267_v44 = vpop.permute.xlu1 %266 }
 0x143   :  { %v275_v62 = vadd.f32 %v267_v44, %v250_v61 }
 0x145   :  { %280 = vst.msk [vmem:[#allocation9 + $0x18] sm:$0xff] %vm276_vm3, %v275_v62 }
 0x146   :  { %361 = shalt.err (!%p358_p3)
}
 0x147   :  { %s362_s20 = scalar_lea.hbm %s534_s3, 512 }
 0x148   :  { %p363_p4 = scmp.ne.s32.totalorder %s534_s3, %s362_s20  ;;  %p366_p5 = scmp.lt.u32.totalorder %s362_s20, %s534_s3 }
 0x14a   :  { %p368_p6 = pnand %p366_p5, %p363_p4 }
 0x14c   :  { %371 = shalt.err (!%p368_p6)
}
 0x14d   :  { %292 = dma.vmem_to_hbm [thread:$0]  %s287_s16, 512, %s534_s3, [#allocation6], %s379_s1, %s379_s1, %s380_s25  }
 0x14e   :  { %376 = dma.done.wait [#allocation6], 512  }
 0x14f   :  { %377 = vsyncadd [#allocation6], 4294966784 }
 0x150   :  { %296 = vsyncpa [#allocation5], 1 }
 0x151   :  { %297 = vsyncpa [#allocation6], 1 }
 0x152   :  { %298 = vsyncpa [#allocation7], 1 }

</bundles_post_ra>
